<compile_context>
chip_gen: v5e
topology: v5e:2x2
jax: 0.10.0
libtpu: 0.0.40
codegen_flags: <defaults>
</compile_context>

<pallas_src>
import jax
import jax.numpy as jnp
from jax.experimental import pallas as pl
from jax.experimental.pallas import tpu as pltpu


def _round_up(a: int, b: int) -> int:
    return ((a + b - 1) // b) * b


def _make_activation_kernel(name: str):
    """Return a Pallas kernel computing the named activation elementwise."""

    def kernel(x_ref, o_ref):
        z = x_ref[...].astype(jnp.float32)          # compute in f32
        if name == "swish":
            y = z * jax.nn.sigmoid(z)               # EUP exp + VPU mul
        elif name == "relu":
            y = jnp.maximum(z, 0.0)
        else:  # gelu
            # TODO(synk): torch.nn.GELU defaults to the exact erf form; the
            # tanh approximation is used here for guaranteed Mosaic lowering.
            y = jax.nn.gelu(z, approximate=True)
        o_ref[...] = y.astype(o_ref.dtype)

    return kernel


def activation(x, name: str = "swish", *, block_rows: int = 512, lane_width: int = 512):
    """Elementwise activation on an arbitrarily-shaped array via Pallas.

    x is flattened, zero-padded to a (rows, lane_width) lane-dense slab,
    processed in (block_rows, lane_width) tiles, then reshaped back.
    """
    if name not in ("swish", "relu", "gelu"):
        raise ValueError(f"unsupported activation: {name}")

    orig_shape = x.shape
    dtype = x.dtype
    n = int(x.size)
    if n == 0:
        return x

    width = lane_width                       # multiple of 128 -> unmasked vst
    rows = -(-n // width)                    # ceil(n / width)
    br = _round_up(min(block_rows, _round_up(rows, 8)), 8)   # sublane-aligned
    rows_padded = _round_up(rows, br)        # every grid tile is full
    padded_n = rows_padded * width

    flat = x.reshape(-1)
    if padded_n != n:
        flat = jnp.pad(flat, (0, padded_n - n))   # zeros; sliced off below
    x2d = flat.reshape(rows_padded, width)

    out2d = pl.pallas_call(
        _make_activation_kernel(name),
        out_shape=jax.ShapeDtypeStruct((rows_padded, width), dtype),
        grid_spec=pltpu.PrefetchScalarGridSpec(
            num_scalar_prefetch=0,
            grid=(rows_padded // br,),
            in_specs=[pl.BlockSpec((br, width), lambda i: (i, 0))],
            out_specs=pl.BlockSpec((br, width), lambda i: (i, 0)),
        ),
        compiler_params=pltpu.CompilerParams(
            dimension_semantics=("parallel",),   # megacore sharding on v7x
        ),
    )(x2d)

    return out2d.reshape(-1)[:n].reshape(orig_shape)


if __name__ == "__main__":
    key = jax.random.PRNGKey(0)
    x = jax.random.normal(key, (2, 4, 16, 16), dtype=jnp.float32)

    # swish (module default)
    out = jax.block_until_ready(activation(x, "swish"))
    ref = x * jax.nn.sigmoid(x)
    assert out.shape == x.shape
    assert out.dtype == x.dtype
    assert jnp.allclose(out, ref, atol=1e-5, rtol=1e-5)

    # relu
    out_relu = jax.block_until_ready(activation(x, "relu"))
    assert jnp.allclose(out_relu, jnp.maximum(x, 0.0), atol=1e-6, rtol=1e-6)

    # gelu (tanh approximation)
    out_gelu = jax.block_until_ready(activation(x, "gelu"))
    assert jnp.allclose(out_gelu, jax.nn.gelu(x, approximate=True), atol=1e-5, rtol=1e-5)

    # bf16 path: output stays bf16 (halves store bytes); math in f32 in-kernel.
    xb = x.astype(jnp.bfloat16)
    out_b = jax.block_until_ready(activation(xb, "swish"))
    zb = xb.astype(jnp.float32)
    refb = (zb * jax.nn.sigmoid(zb)).astype(jnp.bfloat16)
    assert out_b.dtype == jnp.bfloat16
    assert jnp.allclose(out_b.astype(jnp.float32), refb.astype(jnp.float32),
                        atol=1e-2, rtol=1e-2)

    print("KERNEL_OK")
</pallas_src>

<mosaic_0001>
module attributes {stable_mosaic.version = 11 : i64} {
  func.func @kernel(%arg0: i32, %arg1: memref<8x512xf32, #tpu.memory_space<vmem>>, %arg2: memref<8x512xf32, #tpu.memory_space<vmem>>) attributes {dimension_semantics = [#tpu.dimension_semantics<parallel>], iteration_bounds = array<i64: 1>, scalar_prefetch = 0 : i64, scratch_operands = 0 : i64, tpu.core_type = #tpu.core_type<tc>, window_params = [{transform_indices = @transform_0, window_bounds = array<i64: 8, 512>}, {transform_indices = @transform_1, window_bounds = array<i64: 8, 512>}]} {
    %c0 = arith.constant 0 : index
    %c0_0 = arith.constant 0 : index
    %0 = vector.load %arg1[%c0, %c0_0] : memref<8x512xf32, #tpu.memory_space<vmem>>, vector<8x512xf32>
    %1 = arith.negf %0 : vector<8x512xf32>
    %2 = math.exp %1 : vector<8x512xf32>
    %cst = arith.constant 1.000000e+00 : f32
    %3 = vector.broadcast %cst : f32 to vector<8x512xf32>
    %4 = arith.addf %3, %2 : vector<8x512xf32>
    %5 = arith.divf %3, %4 : vector<8x512xf32>
    %6 = arith.mulf %0, %5 : vector<8x512xf32>
    %c0_1 = arith.constant 0 : index
    %c0_2 = arith.constant 0 : index
    %7 = vector.load %arg2[%c0_1, %c0_2] : memref<8x512xf32, #tpu.memory_space<vmem>>, vector<8x512xf32>
    tpu.vector_store %arg2[%c0_1, %c0_2], %6 {strides = array<i32>} : memref<8x512xf32, #tpu.memory_space<vmem>>, vector<8x512xf32>,
    return
  }
  func.func @transform_0(%arg0: i32) -> (i32, i32) {
    %c0_i32 = arith.constant 0 : i32
    %c0_i32_0 = arith.constant 0 : i32
    return %arg0, %c0_i32 : i32, i32
  }
  func.func @transform_1(%arg0: i32) -> (i32, i32) {
    %c0_i32 = arith.constant 0 : i32
    %c0_i32_0 = arith.constant 0 : i32
    return %arg0, %c0_i32 : i32, i32
  }
}

</mosaic_0001>

<bundles_post_ra>
// kernel: tpu_custom_call.1
= control target key start
LH: loop header
LB: loop body
LE: loop exit
PB: predicated region body
PF: predicated region fallthrough
CT: control target
= control target key end

     0   :  { %6 = vsyncpa [#allocation3], 0  ;;  %s276_s0 = inlined_call_operand.hbm [shape: f32[8,512], index: 0, kind: input, shape index: {}]   ;;  %s277_s1 = inlined_call_operand.hbm [shape: f32[8,512], index: 1, kind: output, shape index: {}]  }
   0x1   :  { %7 = vsyncpa [#allocation4], 0  ;;  %s13_s8 = sshll.u32 %s276_s0, 4  ;;  %s202_s9 = smov [#allocation2]   ;;  %s14_s8 = int_to_ptr.hbm [resolvable:$true] %s13_s8 }
   0x2   :  { %s15_s10 = sshll.u32 %s202_s9, 4  ;;  %s16_s10 = int_to_ptr.vmem [resolvable:$true] %s15_s10 }
   0x3   :  { %18 = dma.hbm_to_vmem [thread:$0]  %s14_s8, 512, %s16_s10, [#allocation3]  }
   0x4   :  { %198 = dma.done.wait [#allocation3], 512  }
   0x5   :  { %199 = vsyncadd [#allocation3], 4294966784  ;;  %v217_v0 = vld [vmem:[#allocation2] sm:$0xff]  ;;  %v219_v1 = vld [vmem:[#allocation2 + $0x8] sm:$0xff]  ;;  %s203_s0 = smov [#allocation5]   ;;  %s118_s14 = sshll.u32 %s277_s1, 4  ;;  %s119_s14 = int_to_ptr.hbm [resolvable:$true] %s118_s14 }
   0x6   :  { %v221_v2 = vld [vmem:[#allocation2 + $0x10] sm:$0xff]  ;;  %v128_v3 = vmul.f32 -1.442695, %v217_v0  ;;  %v129_v4 = vmul.f32 -1.442695, %v219_v1  ;;  %v226_v6 = vld [vmem:[#allocation2 + $0x18] sm:$0xff] }
   0x7   :  { %v130_v5 = vmul.f32 -1.442695, %v221_v2  ;;  %v131_v7 = vmul.f32 -1.442695, %v226_v6  ;;  %s116_s11 = sshll.u32 %s203_s0, 4  ;;  %s117_s11 = int_to_ptr.vmem [resolvable:$true] %s116_s11 }
   0x8   :  { %134 = vpow2.f32 %v128_v3 }
   0x9   :  { %136 = vpow2.f32 %v129_v4 }
   0xa   :  { %138 = vpow2.f32 %v130_v5 }
   0xb   :  { %140 = vpow2.f32 %v131_v7 }
   0xe   :  { %v135_v8 = vpop.eup %134 }
   0xf   :  { %v137_v9 = vpop.eup %136  ;;  %v39_v10 = vadd.f32 1.0, %v135_v8 }
  0x10   :  { %v139_v11 = vpop.eup %138  ;;  %v40_v12 = vadd.f32 1.0, %v137_v9 }
  0x11   :  { %v141_v13 = vpop.eup %140  ;;  %142 = vrcp.f32 %v39_v10  ;;  %v41_v14 = vadd.f32 1.0, %v139_v11  ;;  %v52_v16 = vand.u32 2147483647, %v39_v10  ;;  %v54_v17 = vand.u32 2147483648, %v39_v10 }
  0x12   :  { %144 = vrcp.f32 %v40_v12  ;;  %v42_v15 = vadd.f32 1.0, %v141_v13  ;;  %v67_v19 = vand.u32 2147483647, %v40_v12  ;;  %v69_v20 = vand.u32 2147483648, %v40_v12 }
  0x13   :  { %146 = vrcp.f32 %v41_v14  ;;  %vm48_vm0 = vweird.f32 %v39_v10  ;;  %vm63_vm1 = vweird.f32 %v40_v12  ;;  %vm229_vm3 = vcmp.eq.f32.partialorder %v52_v16, 8.507059e+37 }
  0x14   :  { %148 = vrcp.f32 %v42_v15  ;;  %v55_v26 = vor.u32 1.1754944e-38, %v54_v17  ;;  %vm233_vm5 = vcmp.eq.f32.partialorder %v67_v19, 8.507059e+37  ;;  %v70_v30 = vor.u32 1.1754944e-38, %v69_v20 }
  0x15   :  { %vm78_vm6 = vweird.f32 %v41_v14  ;;  %v82_v34 = vand.u32 2147483647, %v41_v14  ;;  %v84_v37 = vand.u32 2147483648, %v41_v14  ;;  %vm93_vm8 = vweird.f32 %v42_v15 }
  0x16   :  { %v99_v42 = vand.u32 2147483648, %v42_v15  ;;  %v97_v45 = vand.u32 2147483647, %v42_v15 }
  0x17   :  { %v143_v18 = vpop.eup %142  ;;  %vm249_vm12 = vcmp.eq.f32.partialorder %v82_v34, 8.507059e+37  ;;  %v85_v52 = vor.u32 1.1754944e-38, %v84_v37 }
  0x18   :  { %v145_v21 = vpop.eup %144  ;;  %v44_v22 = vmul.f32 %v143_v18, %v39_v10  ;;  %vm49_vm2 = vweird.f32 %v143_v18  ;;  %v100_v57 = vor.u32 1.1754944e-38, %v99_v42  ;;  %vm98_vm15 = vcmp.eq.f32.partialorder %v97_v45, 8.507059e+37 }
  0x19   :  { %v59_v23 = vmul.f32 %v145_v21, %v40_v12  ;;  %v147_v27 = vpop.eup %146  ;;  %vm64_vm4 = vweird.f32 %v145_v21  ;;  %vm238_vm7 = vmor %vm48_vm0, %vm49_vm2 }
  0x1a   :  { %v45_v24 = vsub.f32 1.0, %v44_v22  ;;  %v149_v31 = vpop.eup %148  ;;  %v74_v33 = vmul.f32 %v147_v27, %v41_v14  ;;  %vm243_vm9 = vmor %vm63_vm1, %vm64_vm4  ;;  %vm79_vm10 = vweird.f32 %v147_v27 }
  0x1b   :  { %v60_v28 = vsub.f32 1.0, %v59_v23  ;;  %v89_v38 = vmul.f32 %v149_v31, %v42_v15  ;;  %vm94_vm11 = vweird.f32 %v149_v31  ;;  %vm258_vm13 = vmor %vm78_vm6, %vm79_vm10 }
  0x1c   :  { %v46_v32 = vmul.f32 %v143_v18, %v45_v24  ;;  %v75_v41 = vsub.f32 1.0, %v74_v33  ;;  %vm95_vm14 = vmor %vm93_vm8, %vm94_vm11 }
  0x1d   :  { %v61_v36 = vmul.f32 %v145_v21, %v60_v28  ;;  %v90_v44 = vsub.f32 1.0, %v89_v38 }
  0x1e   :  { %v47_v39 = vadd.f32 %v143_v18, %v46_v32  ;;  %v76_v47 = vmul.f32 %v147_v27, %v75_v41 }
  0x1f   :  { %v62_v43 = vadd.f32 %v145_v21, %v61_v36  ;;  %v91_v53 = vmul.f32 %v149_v31, %v90_v44 }
  0x20   :  { %v51_v46 = vsel %vm238_vm7, %v143_v18, %v47_v39  ;;  %v77_v56 = vadd.f32 %v147_v27, %v76_v47 }
  0x21   :  { %v56_v49 = vsel %vm229_vm3, %v55_v26, %v51_v46  ;;  %v66_v50 = vsel %vm243_vm9, %v145_v21, %v62_v43  ;;  %v92_v59 = vadd.f32 %v149_v31, %v91_v53 }
  0x22   :  { %v103_v54 = vmul.f32 %v56_v49, %v217_v0  ;;  %v71_v55 = vsel %vm233_vm5, %v70_v30, %v66_v50  ;;  %v81_v60 = vsel %vm258_vm13, %v147_v27, %v77_v56 }
  0x23   :  { %v104_v58 = vmul.f32 %v71_v55, %v219_v1  ;;  %v86_v61 = vsel %vm249_vm12, %v85_v52, %v81_v60  ;;  %v96_v62 = vsel %vm95_vm14, %v149_v31, %v92_v59 }
  0x24   :  { %107 = vst [vmem:[#allocation5] sm:$0xff] %v103_v54  ;;  %v105_v63 = vmul.f32 %v86_v61, %v221_v2  ;;  %v101_v0 = vsel %vm98_vm15, %v100_v57, %v96_v62 }
  0x25   :  { %108 = vst [vmem:[#allocation5 + $0x8] sm:$0xff] %v104_v58  ;;  %v106_v1 = vmul.f32 %v101_v0, %v226_v6 }
  0x26   :  { %109 = vst [vmem:[#allocation5 + $0x10] sm:$0xff] %v105_v63 }
  0x27   :  { %110 = vst [vmem:[#allocation5 + $0x18] sm:$0xff] %v106_v1 }
  0x28   :  { %121 = dma.vmem_to_hbm [thread:$0]  %s117_s11, 512, %s119_s14, [#allocation4]  }
  0x29   :  { %200 = dma.done.wait [#allocation4], 512  }
  0x2a   :  { %201 = vsyncadd [#allocation4], 4294966784 }
  0x2b   :  { %126 = vsyncpa [#allocation3], 1 }
  0x2c   :  { %127 = vsyncpa [#allocation4], 1 }

</bundles_post_ra>
